<compile_context>
chip_gen: v5e
topology: v5e:2x2
jax: 0.10.0
libtpu: 0.0.40
codegen_flags: <defaults>
</compile_context>

<pallas_src>
import jax
import jax.numpy as jnp
from jax.experimental import pallas as pl
from jax.experimental.pallas import tpu as pltpu


def _num_tensorcores():
    """Best-effort TensorCore-per-chip count (2 on v7x-class chips, else 1)."""
    try:
        info = pltpu.get_tpu_info()
    except Exception:
        info = None
    if info is not None:
        for name in ("num_cores", "num_tensorcores", "tensor_cores_per_chip",
                     "cores_per_chip", "core_count"):
            v = getattr(info, name, None)
            if isinstance(v, int) and 1 <= v <= 8:
                return v
    try:
        v = getattr(jax.devices()[0], "num_cores", None)
        if isinstance(v, int) and 1 <= v <= 8:
            return v
    except Exception:
        pass
    return 1


def _pick_lane_width(n_elems, max_lanes=1024):
    """Largest multiple-of-128 divisor of n_elems (<= max_lanes), or 0."""
    for lanes in range(max_lanes, 0, -128):
        if n_elems % lanes == 0:
            return lanes
    return 0


def _xla_mse(x, y):
    d = x.astype(jnp.float32) - y.astype(jnp.float32)
    return jnp.mean(d * d)


def dwt_l2_mse(x_ll, y_ll, *, target_block_bytes=None,
               small_input_threshold=1 << 20):
    """MSE between two equal-shape arrays via a Pallas TPU reduction kernel."""
    assert x_ll.shape == y_ll.shape, "DWTL2 requires matching shapes"
    n_elems = x_ll.size
    assert n_elems > 0

    # Tiny inputs: pallas_call launch overhead dwarfs the data.
    if n_elems < small_input_threshold:
        return _xla_mse(x_ll, y_ll)

    lane_width = _pick_lane_width(n_elems)
    if lane_width == 0:
        # Flat size not a multiple of 128: no zero-copy lane-dense view exists,
        # and padding/slicing would re-stream both operands through HBM.
        return _xla_mse(x_ll, y_ll)

    m_rows = n_elems // lane_width
    itemsize = max(x_ll.dtype.itemsize, y_ll.dtype.itemsize)

    n_cores = min(_num_tensorcores(), 2)
    if target_block_bytes is None:
        # ~4 MiB per input per step; 8 MiB when two TCs share the stream.
        target_block_bytes = (8 << 20) if n_cores >= 2 else (4 << 20)

    # Size the block by bytes (constant DMA step size across dtypes); keep a
    # multiple of 32 rows so sub-32-bit dtypes stay sublane-pack aligned.
    row_tile = max(32, (target_block_bytes // (lane_width * itemsize)) // 32 * 32)

    if m_rows >= row_tile:
        block_rows = row_tile
    elif m_rows >= 8:
        block_rows = (m_rows // 8) * 8
    else:
        block_rows = m_rows          # full-dim block (allowed even if < 8 rows)

    full_tiles = m_rows // block_rows
    n_split = 2 if (n_cores >= 2 and full_tiles >= 4) else 1
    tiles_per_split = full_tiles // n_split
    tiles_total = n_split * tiles_per_split
    rows_covered = tiles_total * block_rows

    # Zero-copy lane-dense views (bitcast reshapes of contiguous inputs).
    x2 = x_ll.reshape(m_rows, lane_width)
    y2 = y_ll.reshape(m_rows, lane_width)

    red_axis = 1 if n_split > 1 else 0

    def kernel(x_ref, y_ref, o_ref):
        i = pl.program_id(red_axis)

        @pl.when(i == 0)
        def _init():
            o_ref[...] = jnp.zeros_like(o_ref)

        d = x_ref[...].astype(jnp.float32) - y_ref[...].astype(jnp.float32)
        sq = d * d
        if block_rows % 8 == 0:
            # (R, L) -> (R//8, 8, L) is a free major-axis split; the axis-0 sum
            # is pure element-wise VPU adds into 8*L parallel accumulators,
            # fully hidden under the DMA stream.
            o_ref[...] += jnp.sum(sq.reshape(-1, 8, lane_width), axis=0)
        else:
            # Tiny-input path (< 8 rows total): one small cross-sublane reduce.
            o_ref[0:1, :] += jnp.sum(sq, axis=0, keepdims=True)

    if n_split > 1:
        grid = (n_split, tiles_per_split)
        in_map = lambda c, i: (c * tiles_per_split + i, 0)
        out_map = lambda c, i: (c, 0)
        dims = (pltpu.CORE_PARALLEL, pltpu.ARBITRARY)
    else:
        grid = (tiles_total,)
        in_map = lambda i: (i, 0)
        out_map = lambda i: (0, 0)
        dims = ("arbitrary",)

    block_bytes = block_rows * lane_width * itemsize
    # 2 inputs x 2 pipeline buffers + output/slack; safe on v5e/v6e/v7x.
    vmem_limit = min(max(24 << 20, 4 * block_bytes + (8 << 20)), 48 << 20)

    covered = rows_covered * lane_width
    cost = pl.CostEstimate(
        flops=3 * covered,
        transcendentals=0,
        bytes_accessed=covered * (x_ll.dtype.itemsize + y_ll.dtype.itemsize)
        + n_split * 8 * lane_width * 4,
    )

    partials = pl.pallas_call(
        kernel,
        out_shape=jax.ShapeDtypeStruct((n_split * 8, lane_width), jnp.float32),
        grid_spec=pltpu.PrefetchScalarGridSpec(
            num_scalar_prefetch=0,
            grid=grid,
            in_specs=[
                pl.BlockSpec((block_rows, lane_width), in_map),
                pl.BlockSpec((block_rows, lane_width), in_map),
            ],
            out_specs=pl.BlockSpec((8, lane_width), out_map),
        ),
        compiler_params=pltpu.CompilerParams(
            dimension_semantics=dims,
            vmem_limit_bytes=vmem_limit,
        ),
        cost_estimate=cost,
    )(x2, y2)

    total = jnp.sum(partials)

    # Rows not covered by the full-tile grid (< ~2 tiles): fused XLA reduction,
    # folded in outside the kernel -- no padded copies of the operands.
    if rows_covered < m_rows:
        xt = x2[rows_covered:].astype(jnp.float32)
        yt = y2[rows_covered:].astype(jnp.float32)
        total = total + jnp.sum((xt - yt) ** 2)

    # Normalize by the TRUE element count.
    return total * jnp.float32(1.0 / float(n_elems))


if __name__ == "__main__":
    key = jax.random.PRNGKey(0)
    kx, ky = jax.random.split(key)

    # Small NCHW shape consistent with the module's LL-subband inputs.
    x = jax.random.normal(kx, (2, 4, 16, 16), dtype=jnp.float32)
    y = jax.random.normal(ky, (2, 4, 16, 16), dtype=jnp.float32)

    # Force the Pallas path even for this tiny demo shape (production default
    # short-circuits <1M-element inputs to plain XLA).
    score = dwt_l2_mse(x, y, small_input_threshold=0)
    jax.block_until_ready(score)
    ref = jnp.mean((x - y) ** 2)
    assert jnp.allclose(score, ref, rtol=1e-4, atol=1e-6), (score, ref)

    # Larger, tile-aligned case: multiple reduction steps, zero-copy lane-dense
    # view, no remainder.
    kx2, ky2 = jax.random.split(jax.random.PRNGKey(1))
    x_big = jax.random.normal(kx2, (4, 4, 256, 512), dtype=jnp.float32)
    y_big = x_big + 0.1 * jax.random.normal(ky2, x_big.shape, dtype=jnp.float32)
    score_big = dwt_l2_mse(x_big, y_big)
    jax.block_until_ready(score_big)
    ref_big = jnp.mean((x_big - y_big) ** 2)
    assert jnp.allclose(score_big, ref_big, rtol=1e-4, atol=1e-6), (score_big, ref_big)

    # Awkward shape: Pallas reads only the full tiles, the small uncovered row
    # remainder goes through the XLA tail path.
    kx3, ky3 = jax.random.split(jax.random.PRNGKey(2))
    x_odd = jax.random.normal(kx3, (2, 3, 40, 160), dtype=jnp.float32)
    y_odd = jax.random.normal(ky3, x_odd.shape, dtype=jnp.float32)
    score_odd = dwt_l2_mse(x_odd, y_odd, small_input_threshold=0)
    jax.block_until_ready(score_odd)
    ref_odd = jnp.mean((x_odd - y_odd) ** 2)
    assert jnp.allclose(score_odd, ref_odd, rtol=1e-4, atol=1e-6), (score_odd, ref_odd)

    # Flat size not a multiple of 128: dispatcher falls back to fused XLA MSE.
    kx4, ky4 = jax.random.split(jax.random.PRNGKey(3))
    x_frag = jax.random.normal(kx4, (3, 3, 7, 5), dtype=jnp.float32)
    y_frag = jax.random.normal(ky4, x_frag.shape, dtype=jnp.float32)
    score_frag = dwt_l2_mse(x_frag, y_frag, small_input_threshold=0)
    jax.block_until_ready(score_frag)
    ref_frag = jnp.mean((x_frag - y_frag) ** 2)
    assert jnp.allclose(score_frag, ref_frag, rtol=1e-4, atol=1e-6), (score_frag, ref_frag)

    print("KERNEL_OK")
</pallas_src>

<mosaic_0001>
module attributes {stable_mosaic.version = 11 : i64} {
  func.func @kernel(%arg0: i32, %arg1: memref<2x1024xf32, #tpu.memory_space<vmem>>, %arg2: memref<2x1024xf32, #tpu.memory_space<vmem>>, %arg3: memref<8x1024xf32, #tpu.memory_space<vmem>>) attributes {dimension_semantics = [#tpu.dimension_semantics<arbitrary>], iteration_bounds = array<i64: 1>, scalar_prefetch = 0 : i64, scratch_operands = 0 : i64, tpu.core_type = #tpu.core_type<tc>, window_params = [{transform_indices = @transform_0, window_bounds = array<i64: 2, 1024>}, {transform_indices = @transform_1, window_bounds = array<i64: 2, 1024>}, {pipeline_mode = #tpu.pipeline_mode<synchronous>, transform_indices = @transform_2, window_bounds = array<i64: 8, 1024>}]} {
    %c0_i32 = arith.constant 0 : i32
    %0 = arith.cmpi eq, %arg0, %c0_i32 : i32
    %1 = arith.extui %0 : i1 to i32
    %c0_i32_0 = arith.constant 0 : i32
    %2 = arith.cmpi ne, %1, %c0_i32_0 : i32
    scf.if %2 {
      %cst_8 = arith.constant 0.000000e+00 : f32
      %12 = vector.broadcast %cst_8 : f32 to vector<8x1024xf32>
      %c0_9 = arith.constant 0 : index
      %c0_10 = arith.constant 0 : index
      %13 = vector.load %arg3[%c0_9, %c0_10] : memref<8x1024xf32, #tpu.memory_space<vmem>>, vector<8x1024xf32>
      tpu.vector_store %arg3[%c0_9, %c0_10], %12 {strides = array<i32>} : memref<8x1024xf32, #tpu.memory_space<vmem>>, vector<8x1024xf32>,
    } else {
    }
    %c0 = arith.constant 0 : index
    %c0_1 = arith.constant 0 : index
    %3 = vector.load %arg1[%c0, %c0_1] : memref<2x1024xf32, #tpu.memory_space<vmem>>, vector<2x1024xf32>
    %c0_2 = arith.constant 0 : index
    %c0_3 = arith.constant 0 : index
    %4 = vector.load %arg2[%c0_2, %c0_3] : memref<2x1024xf32, #tpu.memory_space<vmem>>, vector<2x1024xf32>
    %5 = arith.subf %3, %4 : vector<2x1024xf32>
    %6 = arith.mulf %5, %5 : vector<2x1024xf32>
    %c0_4 = arith.constant 0 : index
    %c0_5 = arith.constant 0 : index
    %7 = vector.load %arg3[%c0_4, %c0_5] : memref<8x1024xf32, #tpu.memory_space<vmem>>, vector<1x1024xf32>
    %cst = arith.constant dense<0.000000e+00> : vector<1024xf32>
    %8 = vector.multi_reduction <add>, %6, %cst [0] : vector<2x1024xf32> to vector<1024xf32>
    %9 = vector.shape_cast %8 : vector<1024xf32> to vector<1x1024xf32>
    %10 = arith.addf %7, %9 : vector<1x1024xf32>
    %c0_6 = arith.constant 0 : index
    %c0_7 = arith.constant 0 : index
    %11 = vector.load %arg3[%c0_6, %c0_7] : memref<8x1024xf32, #tpu.memory_space<vmem>>, vector<1x1024xf32>
    tpu.vector_store %arg3[%c0_6, %c0_7], %10 {strides = array<i32>} : memref<8x1024xf32, #tpu.memory_space<vmem>>, vector<1x1024xf32>,
    return
  }
  func.func @transform_0(%arg0: i32) -> (i32, i32) {
    %c0_i32 = arith.constant 0 : i32
    %c0_i32_0 = arith.constant 0 : i32
    return %arg0, %c0_i32 : i32, i32
  }
  func.func @transform_1(%arg0: i32) -> (i32, i32) {
    %c0_i32 = arith.constant 0 : i32
    %c0_i32_0 = arith.constant 0 : i32
    return %arg0, %c0_i32 : i32, i32
  }
  func.func @transform_2(%arg0: i32) -> (i32, i32) {
    %c0_i32 = arith.constant 0 : i32
    %c0_i32_0 = arith.constant 0 : i32
    %c0_i32_1 = arith.constant 0 : i32
    return %c0_i32, %c0_i32_0 : i32, i32
  }
}

</mosaic_0001>

<bundles_post_ra>
// kernel: tpu_custom_call.1
= control target key start
LH: loop header
LB: loop body
LE: loop exit
PB: predicated region body
PF: predicated region fallthrough
CT: control target
= control target key end

     0   :  { %7 = vsyncpa [#allocation3], 0  ;;  %s313_s0 = inlined_call_operand.hbm [shape: f32[2,1024], index: 0, kind: input, shape index: {}]   ;;  %s314_s1 = inlined_call_operand.hbm [shape: f32[2,1024], index: 1, kind: input, shape index: {}]   ;;  %s315_s2 = inlined_call_operand.hbm [shape: f32[8,1024], index: 2, kind: output, shape index: {}]  }
   0x1   :  { %8 = vsyncpa [#allocation6], 0 }
   0x2   :  { %9 = vsyncpa [#allocation4], 0  ;;  %s15_s11 = sshll.u32 %s313_s0, 4  ;;  %s273_s12 = smov [#allocation2]   ;;  %s16_s11 = int_to_ptr.hbm [resolvable:$true] %s15_s11 }
   0x3   :  { %s17_s13 = sshll.u32 %s273_s12, 4  ;;  %s26_s16 = sshll.u32 %s314_s1, 4  ;;  %s18_s13 = int_to_ptr.vmem [resolvable:$true] %s17_s13  ;;  %s27_s16 = int_to_ptr.hbm [resolvable:$true] %s26_s16 }
   0x4   :  { %20 = dma.hbm_to_vmem [thread:$0]  %s16_s11, 256, %s18_s13, [#allocation3]  }
   0x5   :  { %s274_s17 = smov [#allocation5]  }
   0x6   :  { %s28_s18 = sshll.u32 %s274_s17, 4  ;;  %s29_s18 = int_to_ptr.vmem [resolvable:$true] %s28_s18 }
   0x7   :  { %31 = dma.hbm_to_vmem [thread:$0]  %s27_s16, 256, %s29_s18, [#allocation6]  }
   0x8   :  { %267 = dma.done.wait [#allocation3], 256  }
   0x9   :  { %268 = vsyncadd [#allocation3], 4294967040 }
   0xa   :  { %269 = dma.done.wait [#allocation6], 256  }
   0xb   :  { %270 = vsyncadd [#allocation6], 4294967040  ;;  %v275_v0 = vmov 0.0   ;;  %v52_v1 = vld [vmem:[#allocation2] sm:$0xff]  ;;  %v54_v2 = vld [vmem:[#allocation5] sm:$0xff]  ;;  %vm84_vm0 = vcmask 1041408  }
   0xc   :  { %44 = vst [vmem:[#allocation7] sm:$0xff] %v275_v0  ;;  %v53_v3 = vld [vmem:[#allocation2 + $0x8] sm:$0xff]  ;;  %v56_v4 = vsub.f32 %v52_v1, %v54_v2  ;;  %v55_v5 = vld [vmem:[#allocation5 + $0x8] sm:$0xff]  ;;  %vm156_vm1 = vcmask 1040384   ;;  %vm158_vm2 = vcmask 1042434   ;;  %vm161_vm3 = vcmask 1044484  }
   0xd   :  { %45 = vst [vmem:[#allocation7 + $0x8] sm:$0xff] %v275_v0  ;;  %v57_v6 = vsub.f32 %v53_v3, %v55_v5  ;;  %vm163_vm4 = vcmask 1046534   ;;  %vm165_vm5 = vcmask 1045508   ;;  %vm167_vm6 = vcmask 1043456   ;;  %s276_s0 = smov [#allocation7]   ;;  %s180_s21 = sshll.u32 %s315_s2, 4  ;;  %s181_s21 = int_to_ptr.hbm [resolvable:$true] %s180_s21 }
   0xe   :  { %46 = vst [vmem:[#allocation7 + $0x10] sm:$0xff] %v275_v0  ;;  %v58_v7 = vmul.f32 %v56_v4, %v56_v4  ;;  %s178_s1 = sshll.u32 %s276_s0, 4  ;;  %s179_s1 = int_to_ptr.vmem [resolvable:$true] %s178_s1 }
   0xf   :  { %47 = vst [vmem:[#allocation7 + $0x18] sm:$0xff] %v275_v0  ;;  %v59_v8 = vmul.f32 %v57_v6, %v57_v6 }
  0x10   :  { %48 = vst [vmem:[#allocation7 + $0x20] sm:$0xff] %v275_v0 }
  0x11   :  { %49 = vst [vmem:[#allocation7 + $0x28] sm:$0xff] %v275_v0 }
  0x12   :  { %50 = vst [vmem:[#allocation7 + $0x30] sm:$0xff] %v275_v0 }
  0x13   :  { %51 = vst [vmem:[#allocation7 + $0x38] sm:$0xff] %v275_v0 }
  0x14   :  { %65 = vst [vmem:[#allocation1] ss:$4 sm:$0xff] %v58_v7 }
  0x15   :  { %67 = vst [vmem:[#allocation1 + $0x20] ss:$4 sm:$0xff] %v59_v8 }
  0x16   :  { %v60_v8 = vld [vmem:[#allocation7] ss:$8 sm:$0xf] }
  0x1b   :  { %v68_v9 = vld.sshfl [vmem:[#allocation1] sm:$0xff pattern:$0x73625140]  ;;  %v69_v10 = vld.sshfl [vmem:[#allocation1 + $0x8] sm:$0xff pattern:$0x73625140] }
  0x1c   :  { %v70_v11 = vld.sshfl [vmem:[#allocation1 + $0x10] sm:$0xff pattern:$0x73625140]  ;;  %v71_v12 = vld.sshfl [vmem:[#allocation1 + $0x18] sm:$0xff pattern:$0x73625140] }
  0x1d   :  { %v72_v13 = vld.sshfl [vmem:[#allocation1 + $0x20] sm:$0xff pattern:$0x73625140]  ;;  %v73_v14 = vld.sshfl [vmem:[#allocation1 + $0x28] sm:$0xff pattern:$0x73625140] }
  0x1e   :  { %v74_v15 = vld.sshfl [vmem:[#allocation1 + $0x30] sm:$0xff pattern:$0x73625140]  ;;  %v75_v16 = vld.sshfl [vmem:[#allocation1 + $0x38] sm:$0xff pattern:$0x73625140] }
  0x1f   :  { %v85_v17 = vsel %vm84_vm0, %v68_v9, 0.0  ;;  %v92_v18 = vsel %vm84_vm0, %v69_v10, 0.0  ;;  %v99_v19 = vsel %vm84_vm0, %v70_v11, 0.0  ;;  %v106_v20 = vsel %vm84_vm0, %v71_v12, 0.0 }
  0x20   :  { %v86_v21 = vrot.slane %v85_v17, 4  ;;  %v93_v22 = vrot.slane %v92_v18, 4  ;;  %v100_v23 = vrot.slane %v99_v19, 4  ;;  %v107_v24 = vrot.slane %v106_v20, 4 }
  0x21   :  { %v113_v25 = vsel %vm84_vm0, %v72_v13, 0.0  ;;  %v120_v26 = vsel %vm84_vm0, %v73_v14, 0.0  ;;  %v127_v27 = vsel %vm84_vm0, %v74_v15, 0.0  ;;  %v134_v28 = vsel %vm84_vm0, %v75_v16, 0.0 }
  0x22   :  { %v87_v29 = vadd.f32 %v86_v21, %v85_v17  ;;  %v94_v30 = vadd.f32 %v93_v22, %v92_v18  ;;  %v101_v31 = vadd.f32 %v100_v23, %v99_v19  ;;  %v108_v32 = vadd.f32 %v107_v24, %v106_v20  ;;  %v61_v9 = vld [vmem:[#allocation7] ss:$8 sm:$0xf0] }
  0x23   :  { %v114_v33 = vrot.slane %v113_v25, 4  ;;  %v121_v34 = vrot.slane %v120_v26, 4  ;;  %v128_v35 = vrot.slane %v127_v27, 4  ;;  %v135_v36 = vrot.slane %v134_v28, 4 }
  0x24   :  { %v88_v37 = vrot.slane %v87_v29, 2  ;;  %v95_v38 = vrot.slane %v94_v30, 2  ;;  %v102_v39 = vrot.slane %v101_v31, 2  ;;  %v109_v40 = vrot.slane %v108_v32, 2 }
  0x25   :  { %v115_v41 = vadd.f32 %v114_v33, %v113_v25  ;;  %v122_v42 = vadd.f32 %v121_v34, %v120_v26  ;;  %v129_v43 = vadd.f32 %v128_v35, %v127_v27  ;;  %v136_v44 = vadd.f32 %v135_v36, %v134_v28 }
  0x26   :  { %v89_v45 = vadd.f32 %v88_v37, %v87_v29  ;;  %v96_v46 = vadd.f32 %v95_v38, %v94_v30  ;;  %v103_v47 = vadd.f32 %v102_v39, %v101_v31  ;;  %v110_v48 = vadd.f32 %v109_v40, %v108_v32 }
  0x27   :  { %v116_v49 = vrot.slane %v115_v41, 2  ;;  %v123_v50 = vrot.slane %v122_v42, 2  ;;  %v130_v51 = vrot.slane %v129_v43, 2  ;;  %v137_v52 = vrot.slane %v136_v44, 2 }
  0x28   :  { %v90_v53 = vrot.slane %v89_v45, 1  ;;  %v97_v54 = vrot.slane %v96_v46, 1  ;;  %v104_v55 = vrot.slane %v103_v47, 1  ;;  %v111_v56 = vrot.slane %v110_v48, 1 }
  0x29   :  { %v117_v57 = vadd.f32 %v116_v49, %v115_v41  ;;  %v124_v58 = vadd.f32 %v123_v50, %v122_v42  ;;  %v131_v59 = vadd.f32 %v130_v51, %v129_v43  ;;  %v138_v60 = vadd.f32 %v137_v52, %v136_v44 }
  0x2a   :  { %v98_v61 = vadd.f32 %v97_v54, %v96_v46  ;;  %v105_v62 = vadd.f32 %v104_v55, %v103_v47  ;;  %v112_v63 = vadd.f32 %v111_v56, %v110_v48  ;;  %v91_v4 = vadd.f32 %v90_v53, %v89_v45 }
  0x2b   :  { %v118_v0 = vrot.slane %v117_v57, 1  ;;  %v125_v1 = vrot.slane %v124_v58, 1  ;;  %v132_v2 = vrot.slane %v131_v59, 1  ;;  %v139_v3 = vrot.slane %v138_v60, 1 }
  0x2c   :  { %v149_v5 = vrot.slane %v98_v61, 7  ;;  %v150_v6 = vrot.slane %v105_v62, 6  ;;  %v151_v7 = vrot.slane %v112_v63, 5  ;;  %v62_v20 = vor.u32 %v61_v9, %v60_v8 }
  0x2d   :  { %v119_v10 = vadd.f32 %v118_v0, %v117_v57  ;;  %v126_v11 = vadd.f32 %v125_v1, %v124_v58  ;;  %v133_v12 = vadd.f32 %v132_v2, %v131_v59  ;;  %v140_v13 = vadd.f32 %v139_v3, %v138_v60 }
  0x2e   :  { %v157_v14 = vsel %vm156_vm1, %v91_v4, %v149_v5  ;;  %v159_v15 = vsel %vm158_vm2, %v150_v6, %v151_v7 }
  0x2f   :  { %v152_v16 = vrot.slane %v119_v10, 4  ;;  %v153_v17 = vrot.slane %v126_v11, 3  ;;  %v154_v18 = vrot.slane %v133_v12, 2  ;;  %v155_v19 = vrot.slane %v140_v13, 1 }
  0x30   :  { %v160_v21 = vsel %vm84_vm0, %v157_v14, %v159_v15 }
  0x31   :  { %v162_v22 = vsel %vm161_vm3, %v152_v16, %v153_v17  ;;  %v164_v23 = vsel %vm163_vm4, %v154_v18, %v155_v19 }
  0x32   :  { %v166_v24 = vsel %vm165_vm5, %v162_v22, %v164_v23 }
  0x33   :  { %v168_v25 = vsel %vm167_vm6, %v160_v21, %v166_v24 }
  0x34   :  { %v170_v26 = vadd.f32 %v168_v25, %v62_v20 }
  0x36   :  { %171 = vst [vmem:[#allocation7] ss:$8 sm:$0xf] %v170_v26 }
  0x37   :  { %172 = vst [vmem:[#allocation7] ss:$8 sm:$0xf0] %v170_v26 }
  0x38   :  { %183 = dma.vmem_to_hbm [thread:$0]  %s179_s1, 1024, %s181_s21, [#allocation4]  }
  0x39   :  { %271 = dma.done.wait [#allocation4], 1024  }
  0x3a   :  { %272 = vsyncadd [#allocation4], 4294966272 }
  0x3b   :  { %188 = vsyncpa [#allocation3], 1 }
  0x3c   :  { %189 = vsyncpa [#allocation6], 1 }
  0x3d   :  { %190 = vsyncpa [#allocation4], 1 }

</bundles_post_ra>
